<compile_context>
chip_gen: v7x
topology: tpu7x:2x2x1
jax: 0.10.0
libtpu: 0.0.40
codegen_flags: <defaults>
</compile_context>

<pallas_src>
import functools

import jax
import jax.numpy as jnp
from jax import lax
from jax.experimental import pallas as pl
from jax.experimental.pallas import tpu as pltpu


def _round_up(x, m):
    return (x + m - 1) // m * m


def _spearman_kernel(in1_ref, m1_ref, in2_ref, m2_ref, out_ref, *, alpha, measure):
    # Block layout: (n, TB) — n on sublanes, TB rows on lanes.
    n, tb = in1_ref.shape

    x1 = in1_ref[...].astype(jnp.float32)          # (n, TB)
    m1 = m1_ref[...].astype(jnp.float32)           # (n, TB)
    x2 = in2_ref[...].astype(jnp.float32)          # (n, TB)
    m2 = m2_ref[...].astype(jnp.float32)           # (n, TB)

    neg = jnp.float32(-100000.0)                   # sentinel for masked targets
    alpha_f = jnp.float32(alpha)

    x2m = jnp.where(m2 > 0, x2, neg)               # masked input2 values
    idx_i = lax.broadcasted_iota(jnp.int32, (n, tb), 0)   # original index i

    def body(j, carry):
        cnt, soft_acc = carry
        # Per-j rows, read directly from the VMEM block refs (native dtype -> f32).
        x1j = in1_ref[pl.ds(j, 1), :].astype(jnp.float32)   # (1, TB)
        m1j = m1_ref[pl.ds(j, 1), :].astype(jnp.float32)    # (1, TB)
        m2j = m2_ref[pl.ds(j, 1), :]                        # (1, TB) raw mask
        x2j = jnp.where(m2j > 0, in2_ref[pl.ds(j, 1), :].astype(jnp.float32), neg)

        # Hard (stable, descending) rank of input2:
        #   rank_i = 1 + #{j : x2[j] > x2[i]} + #{j : x2[j] == x2[i] and j < i}
        # fused into a single boolean/select pass.
        beats = (x2j > x2m) | ((x2j == x2m) & (j < idx_i))
        cnt = cnt + jnp.where(beats, jnp.float32(1.0), jnp.float32(0.0))

        # Soft rank of input1: accumulate sigmoid((x1[j] - x1[i]) * alpha) * m1[j].
        soft_acc = soft_acc + jax.nn.sigmoid((x1j - x1) * alpha_f) * m1j
        return cnt, soft_acc

    cnt0 = jnp.zeros((n, tb), jnp.float32)
    s0 = jnp.zeros((n, tb), jnp.float32)
    cnt, soft_acc = lax.fori_loop(0, n, body, (cnt0, s0), unroll=True)

    # targets_sorted_indexes = (rank) * mask2
    tgt = (1.0 + cnt) * m2
    # inputs_sorted_indexes = (0.5 + m1_i * sum_j sigmoid(...) * m1_j) * m1_i
    soft = (0.5 + m1 * soft_acc) * m1

    diff = tgt - soft
    if measure == "l1":
        dist_e = jnp.abs(diff)
    elif measure == "l2":
        dist_e = diff * diff
    elif measure == "smooth_l1":
        ad = jnp.abs(diff)
        dist_e = jnp.where(ad < 1.0, 0.5 * diff * diff, ad - 0.5)
    else:
        raise ValueError(measure)

    s = jnp.sum(dist_e, axis=0, keepdims=True)     # (1, TB) — small sublane reduce
    d = jnp.sum(m1, axis=0, keepdims=True)         # (1, TB)
    den = d * (d * d - 1.0)

    # EUP approximate reciprocal + one Newton refinement (~fp32 accuracy).
    inv = pl.reciprocal(den, approx=True)
    inv = inv * (2.0 - den * inv)

    out_ref[...] = 1.0 - 6.0 * s * inv             # lane-dense (1, TB) store


def spearman(input1, mask1, input2, mask2, *, alpha=1.0, measure="l2", tb=512):
    """input*/mask* shape (bs, 4, num_heads, n); returns (bs, num_heads, 4) float32."""
    assert measure in ("l1", "l2", "smooth_l1")
    bs, c, h, n = input1.shape
    B = bs * c * h

    # Lane-dense row tile: multiple of 128, but don't over-pad tiny batches.
    tb = max(128, min(_round_up(tb, 128), _round_up(B, 128)))
    B_pad = _round_up(B, tb)

    def prep(x):
        # Flatten rows, pad rows (padded rows have mask 0 and are sliced out),
        # then put rows on the lane axis: (n, B_pad). Native dtype is kept;
        # casting happens inside the kernel.
        x = x.reshape(B, n)
        if B_pad != B:
            x = jnp.pad(x, ((0, B_pad - B), (0, 0)))
        return x.T

    kernel = functools.partial(_spearman_kernel, alpha=float(alpha), measure=measure)
    row_spec = pl.BlockSpec((n, tb), lambda i: (0, i))

    out = pl.pallas_call(
        kernel,
        out_shape=jax.ShapeDtypeStruct((1, B_pad), jnp.float32),
        grid_spec=pltpu.PrefetchScalarGridSpec(
            num_scalar_prefetch=0,
            grid=(B_pad // tb,),
            in_specs=[row_spec, row_spec, row_spec, row_spec],
            out_specs=pl.BlockSpec((1, tb), lambda i: (0, i)),
        ),
        compiler_params=pltpu.CompilerParams(dimension_semantics=("parallel",)),
    )(prep(input1), prep(mask1), prep(input2), prep(mask2))

    corr = out[0, :B].reshape(bs, c, h)
    return jnp.transpose(corr, (0, 2, 1))          # permute((0, 2, 1))


def spearman_ref(input1, mask1, input2, mask2, *, alpha=1.0, measure="l2"):
    """Pure-JAX reference mirroring the PyTorch forward."""
    x1 = input1.astype(jnp.float32)
    m1 = mask1.astype(jnp.float32)
    m2 = mask2.astype(jnp.float32)
    x2 = jnp.where(mask2 > 0, input2.astype(jnp.float32), -100000.0)
    order = jnp.argsort(-x2, axis=-1)                 # descending, stable
    tgt = jnp.argsort(order, axis=-1).astype(jnp.float32) + 1.0
    tgt = tgt * m2
    mm = m1[..., :, None] * m1[..., None, :]
    dist = x1[..., :, None] - x1[..., None, :]
    soft = 0.5 + jnp.sum(jax.nn.sigmoid(-dist * alpha) * mm, axis=-1)
    soft = soft * m1
    diff = tgt - soft
    if measure == "l1":
        e = jnp.abs(diff)
    elif measure == "l2":
        e = diff * diff
    else:
        ad = jnp.abs(diff)
        e = jnp.where(ad < 1.0, 0.5 * diff * diff, ad - 0.5)
    d = jnp.sum(m1, axis=-1)
    corr = 1.0 - 6.0 * jnp.sum(e, axis=-1) / (d * (d * d - 1.0))
    return jnp.transpose(corr, (0, 2, 1))


def _make_inputs(key, bs, c, h, n):
    k1, k2, k3, k4 = jax.random.split(key, 4)
    input1 = jax.random.normal(k1, (bs, c, h, n), dtype=jnp.float32)
    input2 = jax.random.normal(k2, (bs, c, h, n), dtype=jnp.float32)
    m1 = (jax.random.uniform(k3, (bs, c, h, n)) > 0.3).astype(jnp.float32)
    m2 = (jax.random.uniform(k4, (bs, c, h, n)) > 0.3).astype(jnp.float32)
    # keep at least 4 valid positions per row so d*(d^2-1) != 0
    m1 = m1.at[..., :4].set(1.0)
    m2 = m2.at[..., :4].set(1.0)
    return input1, m1, input2, m2


if __name__ == "__main__":
    key = jax.random.PRNGKey(0)
    k_a, k_b = jax.random.split(key)

    # Case 1: B = 64 rows -> padded to a single 128-lane block.
    bs, c, h, n = 2, 4, 8, 8
    i1, m1, i2, m2 = _make_inputs(k_a, bs, c, h, n)
    out = spearman(i1, m1, i2, m2, alpha=1.0, measure="l2")
    jax.block_until_ready(out)
    ref = spearman_ref(i1, m1, i2, m2, alpha=1.0, measure="l2")
    assert out.shape == (bs, h, c), out.shape
    assert jnp.allclose(out, ref, rtol=1e-4, atol=1e-4), (out, ref)

    # Case 2: B = 256 rows with tb=128 -> 2-step grid (multi-block path).
    bs2, c2, h2, n2 = 2, 4, 32, 8
    j1, jm1, j2, jm2 = _make_inputs(k_b, bs2, c2, h2, n2)
    out2 = spearman(j1, jm1, j2, jm2, alpha=1.0, measure="l2", tb=128)
    jax.block_until_ready(out2)
    ref2 = spearman_ref(j1, jm1, j2, jm2, alpha=1.0, measure="l2")
    assert out2.shape == (bs2, h2, c2), out2.shape
    assert jnp.allclose(out2, ref2, rtol=1e-4, atol=1e-4), (out2, ref2)

    print("KERNEL_OK")
</pallas_src>

<mosaic_0001>
module attributes {stable_mosaic.version = 11 : i64} {
  func.func @_spearman_kernel(%arg0: i32, %arg1: memref<8x128xf32, #tpu.memory_space<vmem>>, %arg2: memref<8x128xf32, #tpu.memory_space<vmem>>, %arg3: memref<8x128xf32, #tpu.memory_space<vmem>>, %arg4: memref<8x128xf32, #tpu.memory_space<vmem>>, %arg5: memref<1x128xf32, #tpu.memory_space<vmem>>) attributes {dimension_semantics = [#tpu.dimension_semantics<parallel>], iteration_bounds = array<i64: 1>, scalar_prefetch = 0 : i64, scratch_operands = 0 : i64, tpu.core_type = #tpu.core_type<tc>, window_params = [{transform_indices = @transform_0, window_bounds = array<i64: 8, 128>}, {transform_indices = @transform_1, window_bounds = array<i64: 8, 128>}, {transform_indices = @transform_2, window_bounds = array<i64: 8, 128>}, {transform_indices = @transform_3, window_bounds = array<i64: 8, 128>}, {transform_indices = @transform_4, window_bounds = array<i64: 1, 128>}]} {
    %c0 = arith.constant 0 : index
    %c0_0 = arith.constant 0 : index
    %0 = vector.load %arg1[%c0, %c0_0] : memref<8x128xf32, #tpu.memory_space<vmem>>, vector<8x128xf32>
    %c0_1 = arith.constant 0 : index
    %c0_2 = arith.constant 0 : index
    %1 = vector.load %arg2[%c0_1, %c0_2] : memref<8x128xf32, #tpu.memory_space<vmem>>, vector<8x128xf32>
    %c0_3 = arith.constant 0 : index
    %c0_4 = arith.constant 0 : index
    %2 = vector.load %arg3[%c0_3, %c0_4] : memref<8x128xf32, #tpu.memory_space<vmem>>, vector<8x128xf32>
    %c0_5 = arith.constant 0 : index
    %c0_6 = arith.constant 0 : index
    %3 = vector.load %arg4[%c0_5, %c0_6] : memref<8x128xf32, #tpu.memory_space<vmem>>, vector<8x128xf32>
    %cst = arith.constant 0.000000e+00 : f32
    %4 = vector.broadcast %cst : f32 to vector<8x128xf32>
    %5 = arith.cmpf ogt, %3, %4 : vector<8x128xf32>
    %cst_7 = arith.constant -1.000000e+05 : f32
    %6 = vector.broadcast %cst_7 : f32 to vector<8x128xf32>
    %7 = arith.select %5, %2, %6 : vector<8x128xi1>, vector<8x128xf32>
    %8 = tpu.iota {dimensions = array<i32: 0>} : vector<8x128xi32>
    %cst_8 = arith.constant 0.000000e+00 : f32
    %9 = vector.broadcast %cst_8 : f32 to vector<8x128xf32>
    %cst_9 = arith.constant 0.000000e+00 : f32
    %10 = vector.broadcast %cst_9 : f32 to vector<8x128xf32>
    %cst_10 = arith.constant -1.000000e+05 : f32
    %cst_11 = arith.constant 1.000000e+00 : f32
    %c0_i32 = arith.constant 0 : i32
    %11 = arith.index_cast %c0_i32 : i32 to index
    %c0_12 = arith.constant 0 : index
    %12 = vector.load %arg1[%11, %c0_12] : memref<8x128xf32, #tpu.memory_space<vmem>>, vector<1x128xf32>
    %13 = arith.index_cast %c0_i32 : i32 to index
    %c0_13 = arith.constant 0 : index
    %14 = vector.load %arg2[%13, %c0_13] : memref<8x128xf32, #tpu.memory_space<vmem>>, vector<1x128xf32>
    %15 = arith.index_cast %c0_i32 : i32 to index
    %c0_14 = arith.constant 0 : index
    %16 = vector.load %arg4[%15, %c0_14] : memref<8x128xf32, #tpu.memory_space<vmem>>, vector<1x128xf32>
    %cst_15 = arith.constant 0.000000e+00 : f32
    %17 = vector.broadcast %cst_15 : f32 to vector<1x128xf32>
    %18 = arith.cmpf ogt, %16, %17 : vector<1x128xf32>
    %19 = arith.index_cast %c0_i32 : i32 to index
    %c0_16 = arith.constant 0 : index
    %20 = vector.load %arg3[%19, %c0_16] : memref<8x128xf32, #tpu.memory_space<vmem>>, vector<1x128xf32>
    %21 = vector.broadcast %cst_10 : f32 to vector<1x128xf32>
    %22 = arith.select %18, %20, %21 : vector<1x128xi1>, vector<1x128xf32>
    %23 = vector.broadcast %22 : vector<1x128xf32> to vector<8x128xf32>
    %24 = arith.cmpf ogt, %23, %7 : vector<8x128xf32>
    %25 = vector.broadcast %22 : vector<1x128xf32> to vector<8x128xf32>
    %26 = arith.cmpf oeq, %25, %7 : vector<8x128xf32>
    %27 = vector.broadcast %c0_i32 : i32 to vector<8x128xi32>
    %28 = arith.cmpi slt, %27, %8 : vector<8x128xi32>
    %29 = arith.andi %26, %28 : vector<8x128xi1>
    %30 = arith.ori %24, %29 : vector<8x128xi1>
    %cst_17 = arith.constant 1.000000e+00 : f32
    %cst_18 = arith.constant 0.000000e+00 : f32
    %31 = vector.broadcast %cst_17 : f32 to vector<8x128xf32>
    %32 = vector.broadcast %cst_18 : f32 to vector<8x128xf32>
    %33 = arith.select %30, %31, %32 : vector<8x128xi1>, vector<8x128xf32>
    %34 = arith.addf %9, %33 : vector<8x128xf32>
    %35 = vector.broadcast %12 : vector<1x128xf32> to vector<8x128xf32>
    %36 = arith.subf %35, %0 : vector<8x128xf32>
    %37 = vector.broadcast %cst_11 : f32 to vector<8x128xf32>
    %38 = arith.mulf %36, %37 : vector<8x128xf32>
    %39 = arith.negf %38 : vector<8x128xf32>
    %40 = math.exp %39 : vector<8x128xf32>
    %cst_19 = arith.constant 1.000000e+00 : f32
    %41 = vector.broadcast %cst_19 : f32 to vector<8x128xf32>
    %42 = arith.addf %41, %40 : vector<8x128xf32>
    %43 = arith.divf %41, %42 : vector<8x128xf32>
    %44 = vector.broadcast %14 : vector<1x128xf32> to vector<8x128xf32>
    %45 = arith.mulf %43, %44 : vector<8x128xf32>
    %46 = arith.addf %10, %45 : vector<8x128xf32>
    %c1_i32 = arith.constant 1 : i32
    %47 = arith.index_cast %c1_i32 : i32 to index
    %c0_20 = arith.constant 0 : index
    %48 = vector.load %arg1[%47, %c0_20] : memref<8x128xf32, #tpu.memory_space<vmem>>, vector<1x128xf32>
    %49 = arith.index_cast %c1_i32 : i32 to index
    %c0_21 = arith.constant 0 : index
    %50 = vector.load %arg2[%49, %c0_21] : memref<8x128xf32, #tpu.memory_space<vmem>>, vector<1x128xf32>
    %51 = arith.index_cast %c1_i32 : i32 to index
    %c0_22 = arith.constant 0 : index
    %52 = vector.load %arg4[%51, %c0_22] : memref<8x128xf32, #tpu.memory_space<vmem>>, vector<1x128xf32>
    %cst_23 = arith.constant 0.000000e+00 : f32
    %53 = vector.broadcast %cst_23 : f32 to vector<1x128xf32>
    %54 = arith.cmpf ogt, %52, %53 : vector<1x128xf32>
    %55 = arith.index_cast %c1_i32 : i32 to index
    %c0_24 = arith.constant 0 : index
    %56 = vector.load %arg3[%55, %c0_24] : memref<8x128xf32, #tpu.memory_space<vmem>>, vector<1x128xf32>
    %57 = vector.broadcast %cst_10 : f32 to vector<1x128xf32>
    %58 = arith.select %54, %56, %57 : vector<1x128xi1>, vector<1x128xf32>
    %59 = vector.broadcast %58 : vector<1x128xf32> to vector<8x128xf32>
    %60 = arith.cmpf ogt, %59, %7 : vector<8x128xf32>
    %61 = vector.broadcast %58 : vector<1x128xf32> to vector<8x128xf32>
    %62 = arith.cmpf oeq, %61, %7 : vector<8x128xf32>
    %63 = vector.broadcast %c1_i32 : i32 to vector<8x128xi32>
    %64 = arith.cmpi slt, %63, %8 : vector<8x128xi32>
    %65 = arith.andi %62, %64 : vector<8x128xi1>
    %66 = arith.ori %60, %65 : vector<8x128xi1>
    %cst_25 = arith.constant 1.000000e+00 : f32
    %cst_26 = arith.constant 0.000000e+00 : f32
    %67 = vector.broadcast %cst_25 : f32 to vector<8x128xf32>
    %68 = vector.broadcast %cst_26 : f32 to vector<8x128xf32>
    %69 = arith.select %66, %67, %68 : vector<8x128xi1>, vector<8x128xf32>
    %70 = arith.addf %34, %69 : vector<8x128xf32>
    %71 = vector.broadcast %48 : vector<1x128xf32> to vector<8x128xf32>
    %72 = arith.subf %71, %0 : vector<8x128xf32>
    %73 = vector.broadcast %cst_11 : f32 to vector<8x128xf32>
    %74 = arith.mulf %72, %73 : vector<8x128xf32>
    %75 = arith.negf %74 : vector<8x128xf32>
    %76 = math.exp %75 : vector<8x128xf32>
    %cst_27 = arith.constant 1.000000e+00 : f32
    %77 = vector.broadcast %cst_27 : f32 to vector<8x128xf32>
    %78 = arith.addf %77, %76 : vector<8x128xf32>
    %79 = arith.divf %77, %78 : vector<8x128xf32>
    %80 = vector.broadcast %50 : vector<1x128xf32> to vector<8x128xf32>
    %81 = arith.mulf %79, %80 : vector<8x128xf32>
    %82 = arith.addf %46, %81 : vector<8x128xf32>
    %c2_i32 = arith.constant 2 : i32
    %83 = arith.index_cast %c2_i32 : i32 to index
    %c0_28 = arith.constant 0 : index
    %84 = vector.load %arg1[%83, %c0_28] : memref<8x128xf32, #tpu.memory_space<vmem>>, vector<1x128xf32>
    %85 = arith.index_cast %c2_i32 : i32 to index
    %c0_29 = arith.constant 0 : index
    %86 = vector.load %arg2[%85, %c0_29] : memref<8x128xf32, #tpu.memory_space<vmem>>, vector<1x128xf32>
    %87 = arith.index_cast %c2_i32 : i32 to index
    %c0_30 = arith.constant 0 : index
    %88 = vector.load %arg4[%87, %c0_30] : memref<8x128xf32, #tpu.memory_space<vmem>>, vector<1x128xf32>
    %cst_31 = arith.constant 0.000000e+00 : f32
    %89 = vector.broadcast %cst_31 : f32 to vector<1x128xf32>
    %90 = arith.cmpf ogt, %88, %89 : vector<1x128xf32>
    %91 = arith.index_cast %c2_i32 : i32 to index
    %c0_32 = arith.constant 0 : index
    %92 = vector.load %arg3[%91, %c0_32] : memref<8x128xf32, #tpu.memory_space<vmem>>, vector<1x128xf32>
    %93 = vector.broadcast %cst_10 : f32 to vector<1x128xf32>
    %94 = arith.select %90, %92, %93 : vector<1x128xi1>, vector<1x128xf32>
    %95 = vector.broadcast %94 : vector<1x128xf32> to vector<8x128xf32>
    %96 = arith.cmpf ogt, %95, %7 : vector<8x128xf32>
    %97 = vector.broadcast %94 : vector<1x128xf32> to vector<8x128xf32>
    %98 = arith.cmpf oeq, %97, %7 : vector<8x128xf32>
    %99 = vector.broadcast %c2_i32 : i32 to vector<8x128xi32>
    %100 = arith.cmpi slt, %99, %8 : vector<8x128xi32>
    %101 = arith.andi %98, %100 : vector<8x128xi1>
    %102 = arith.ori %96, %101 : vector<8x128xi1>
    %cst_33 = arith.constant 1.000000e+00 : f32
    %cst_34 = arith.constant 0.000000e+00 : f32
    %103 = vector.broadcast %cst_33 : f32 to vector<8x128xf32>
    %104 = vector.broadcast %cst_34 : f32 to vector<8x128xf32>
    %105 = arith.select %102, %103, %104 : vector<8x128xi1>, vector<8x128xf32>
    %106 = arith.addf %70, %105 : vector<8x128xf32>
    %107 = vector.broadcast %84 : vector<1x128xf32> to vector<8x128xf32>
    %108 = arith.subf %107, %0 : vector<8x128xf32>
    %109 = vector.broadcast %cst_11 : f32 to vector<8x128xf32>
    %110 = arith.mulf %108, %109 : vector<8x128xf32>
    %111 = arith.negf %110 : vector<8x128xf32>
    %112 = math.exp %111 : vector<8x128xf32>
    %cst_35 = arith.constant 1.000000e+00 : f32
    %113 = vector.broadcast %cst_35 : f32 to vector<8x128xf32>
    %114 = arith.addf %113, %112 : vector<8x128xf32>
    %115 = arith.divf %113, %114 : vector<8x128xf32>
    %116 = vector.broadcast %86 : vector<1x128xf32> to vector<8x128xf32>
    %117 = arith.mulf %115, %116 : vector<8x128xf32>
    %118 = arith.addf %82, %117 : vector<8x128xf32>
    %c3_i32 = arith.constant 3 : i32
    %119 = arith.index_cast %c3_i32 : i32 to index
    %c0_36 = arith.constant 0 : index
    %120 = vector.load %arg1[%119, %c0_36] : memref<8x128xf32, #tpu.memory_space<vmem>>, vector<1x128xf32>
    %121 = arith.index_cast %c3_i32 : i32 to index
    %c0_37 = arith.constant 0 : index
    %122 = vector.load %arg2[%121, %c0_37] : memref<8x128xf32, #tpu.memory_space<vmem>>, vector<1x128xf32>
    %123 = arith.index_cast %c3_i32 : i32 to index
    %c0_38 = arith.constant 0 : index
    %124 = vector.load %arg4[%123, %c0_38] : memref<8x128xf32, #tpu.memory_space<vmem>>, vector<1x128xf32>
    %cst_39 = arith.constant 0.000000e+00 : f32
    %125 = vector.broadcast %cst_39 : f32 to vector<1x128xf32>
    %126 = arith.cmpf ogt, %124, %125 : vector<1x128xf32>
    %127 = arith.index_cast %c3_i32 : i32 to index
    %c0_40 = arith.constant 0 : index
    %128 = vector.load %arg3[%127, %c0_40] : memref<8x128xf32, #tpu.memory_space<vmem>>, vector<1x128xf32>
    %129 = vector.broadcast %cst_10 : f32 to vector<1x128xf32>
    %130 = arith.select %126, %128, %129 : vector<1x128xi1>, vector<1x128xf32>
    %131 = vector.broadcast %130 : vector<1x128xf32> to vector<8x128xf32>
    %132 = arith.cmpf ogt, %131, %7 : vector<8x128xf32>
    %133 = vector.broadcast %130 : vector<1x128xf32> to vector<8x128xf32>
    %134 = arith.cmpf oeq, %133, %7 : vector<8x128xf32>
    %135 = vector.broadcast %c3_i32 : i32 to vector<8x128xi32>
    %136 = arith.cmpi slt, %135, %8 : vector<8x128xi32>
    %137 = arith.andi %134, %136 : vector<8x128xi1>
    %138 = arith.ori %132, %137 : vector<8x128xi1>
    %cst_41 = arith.constant 1.000000e+00 : f32
    %cst_42 = arith.constant 0.000000e+00 : f32
    %139 = vector.broadcast %cst_41 : f32 to vector<8x128xf32>
    %140 = vector.broadcast %cst_42 : f32 to vector<8x128xf32>
    %141 = arith.select %138, %139, %140 : vector<8x128xi1>, vector<8x128xf32>
    %142 = arith.addf %106, %141 : vector<8x128xf32>
    %143 = vector.broadcast %120 : vector<1x128xf32> to vector<8x128xf32>
    %144 = arith.subf %143, %0 : vector<8x128xf32>
    %145 = vector.broadcast %cst_11 : f32 to vector<8x128xf32>
    %146 = arith.mulf %144, %145 : vector<8x128xf32>
    %147 = arith.negf %146 : vector<8x128xf32>
    %148 = math.exp %147 : vector<8x128xf32>
    %cst_43 = arith.constant 1.000000e+00 : f32
    %149 = vector.broadcast %cst_43 : f32 to vector<8x128xf32>
    %150 = arith.addf %149, %148 : vector<8x128xf32>
    %151 = arith.divf %149, %150 : vector<8x128xf32>
    %152 = vector.broadcast %122 : vector<1x128xf32> to vector<8x128xf32>
    %153 = arith.mulf %151, %152 : vector<8x128xf32>
    %154 = arith.addf %118, %153 : vector<8x128xf32>
    %c4_i32 = arith.constant 4 : i32
    %155 = arith.index_cast %c4_i32 : i32 to index
    %c0_44 = arith.constant 0 : index
    %156 = vector.load %arg1[%155, %c0_44] : memref<8x128xf32, #tpu.memory_space<vmem>>, vector<1x128xf32>
    %157 = arith.index_cast %c4_i32 : i32 to index
    %c0_45 = arith.constant 0 : index
    %158 = vector.load %arg2[%157, %c0_45] : memref<8x128xf32, #tpu.memory_space<vmem>>, vector<1x128xf32>
    %159 = arith.index_cast %c4_i32 : i32 to index
    %c0_46 = arith.constant 0 : index
    %160 = vector.load %arg4[%159, %c0_46] : memref<8x128xf32, #tpu.memory_space<vmem>>, vector<1x128xf32>
    %cst_47 = arith.constant 0.000000e+00 : f32
    %161 = vector.broadcast %cst_47 : f32 to vector<1x128xf32>
    %162 = arith.cmpf ogt, %160, %161 : vector<1x128xf32>
    %163 = arith.index_cast %c4_i32 : i32 to index
    %c0_48 = arith.constant 0 : index
    %164 = vector.load %arg3[%163, %c0_48] : memref<8x128xf32, #tpu.memory_space<vmem>>, vector<1x128xf32>
    %165 = vector.broadcast %cst_10 : f32 to vector<1x128xf32>
    %166 = arith.select %162, %164, %165 : vector<1x128xi1>, vector<1x128xf32>
    %167 = vector.broadcast %166 : vector<1x128xf32> to vector<8x128xf32>
    %168 = arith.cmpf ogt, %167, %7 : vector<8x128xf32>
    %169 = vector.broadcast %166 : vector<1x128xf32> to vector<8x128xf32>
    %170 = arith.cmpf oeq, %169, %7 : vector<8x128xf32>
    %171 = vector.broadcast %c4_i32 : i32 to vector<8x128xi32>
    %172 = arith.cmpi slt, %171, %8 : vector<8x128xi32>
    %173 = arith.andi %170, %172 : vector<8x128xi1>
    %174 = arith.ori %168, %173 : vector<8x128xi1>
    %cst_49 = arith.constant 1.000000e+00 : f32
    %cst_50 = arith.constant 0.000000e+00 : f32
    %175 = vector.broadcast %cst_49 : f32 to vector<8x128xf32>
    %176 = vector.broadcast %cst_50 : f32 to vector<8x128xf32>
    %177 = arith.select %174, %175, %176 : vector<8x128xi1>, vector<8x128xf32>
    %178 = arith.addf %142, %177 : vector<8x128xf32>
    %179 = vector.broadcast %156 : vector<1x128xf32> to vector<8x128xf32>
    %180 = arith.subf %179, %0 : vector<8x128xf32>
    %181 = vector.broadcast %cst_11 : f32 to vector<8x128xf32>
    %182 = arith.mulf %180, %181 : vector<8x128xf32>
    %183 = arith.negf %182 : vector<8x128xf32>
    %184 = math.exp %183 : vector<8x128xf32>
    %cst_51 = arith.constant 1.000000e+00 : f32
    %185 = vector.broadcast %cst_51 : f32 to vector<8x128xf32>
    %186 = arith.addf %185, %184 : vector<8x128xf32>
    %187 = arith.divf %185, %186 : vector<8x128xf32>
    %188 = vector.broadcast %158 : vector<1x128xf32> to vector<8x128xf32>
    %189 = arith.mulf %187, %188 : vector<8x128xf32>
    %190 = arith.addf %154, %189 : vector<8x128xf32>
    %c5_i32 = arith.constant 5 : i32
    %191 = arith.index_cast %c5_i32 : i32 to index
    %c0_52 = arith.constant 0 : index
    %192 = vector.load %arg1[%191, %c0_52] : memref<8x128xf32, #tpu.memory_space<vmem>>, vector<1x128xf32>
    %193 = arith.index_cast %c5_i32 : i32 to index
    %c0_53 = arith.constant 0 : index
    %194 = vector.load %arg2[%193, %c0_53] : memref<8x128xf32, #tpu.memory_space<vmem>>, vector<1x128xf32>
    %195 = arith.index_cast %c5_i32 : i32 to index
    %c0_54 = arith.constant 0 : index
    %196 = vector.load %arg4[%195, %c0_54] : memref<8x128xf32, #tpu.memory_space<vmem>>, vector<1x128xf32>
    %cst_55 = arith.constant 0.000000e+00 : f32
    %197 = vector.broadcast %cst_55 : f32 to vector<1x128xf32>
    %198 = arith.cmpf ogt, %196, %197 : vector<1x128xf32>
    %199 = arith.index_cast %c5_i32 : i32 to index
    %c0_56 = arith.constant 0 : index
    %200 = vector.load %arg3[%199, %c0_56] : memref<8x128xf32, #tpu.memory_space<vmem>>, vector<1x128xf32>
    %201 = vector.broadcast %cst_10 : f32 to vector<1x128xf32>
    %202 = arith.select %198, %200, %201 : vector<1x128xi1>, vector<1x128xf32>
    %203 = vector.broadcast %202 : vector<1x128xf32> to vector<8x128xf32>
    %204 = arith.cmpf ogt, %203, %7 : vector<8x128xf32>
    %205 = vector.broadcast %202 : vector<1x128xf32> to vector<8x128xf32>
    %206 = arith.cmpf oeq, %205, %7 : vector<8x128xf32>
    %207 = vector.broadcast %c5_i32 : i32 to vector<8x128xi32>
    %208 = arith.cmpi slt, %207, %8 : vector<8x128xi32>
    %209 = arith.andi %206, %208 : vector<8x128xi1>
    %210 = arith.ori %204, %209 : vector<8x128xi1>
    %cst_57 = arith.constant 1.000000e+00 : f32
    %cst_58 = arith.constant 0.000000e+00 : f32
    %211 = vector.broadcast %cst_57 : f32 to vector<8x128xf32>
    %212 = vector.broadcast %cst_58 : f32 to vector<8x128xf32>
    %213 = arith.select %210, %211, %212 : vector<8x128xi1>, vector<8x128xf32>
    %214 = arith.addf %178, %213 : vector<8x128xf32>
    %215 = vector.broadcast %192 : vector<1x128xf32> to vector<8x128xf32>
    %216 = arith.subf %215, %0 : vector<8x128xf32>
    %217 = vector.broadcast %cst_11 : f32 to vector<8x128xf32>
    %218 = arith.mulf %216, %217 : vector<8x128xf32>
    %219 = arith.negf %218 : vector<8x128xf32>
    %220 = math.exp %219 : vector<8x128xf32>
    %cst_59 = arith.constant 1.000000e+00 : f32
    %221 = vector.broadcast %cst_59 : f32 to vector<8x128xf32>
    %222 = arith.addf %221, %220 : vector<8x128xf32>
    %223 = arith.divf %221, %222 : vector<8x128xf32>
    %224 = vector.broadcast %194 : vector<1x128xf32> to vector<8x128xf32>
    %225 = arith.mulf %223, %224 : vector<8x128xf32>
    %226 = arith.addf %190, %225 : vector<8x128xf32>
    %c6_i32 = arith.constant 6 : i32
    %227 = arith.index_cast %c6_i32 : i32 to index
    %c0_60 = arith.constant 0 : index
    %228 = vector.load %arg1[%227, %c0_60] : memref<8x128xf32, #tpu.memory_space<vmem>>, vector<1x128xf32>
    %229 = arith.index_cast %c6_i32 : i32 to index
    %c0_61 = arith.constant 0 : index
    %230 = vector.load %arg2[%229, %c0_61] : memref<8x128xf32, #tpu.memory_space<vmem>>, vector<1x128xf32>
    %231 = arith.index_cast %c6_i32 : i32 to index
    %c0_62 = arith.constant 0 : index
    %232 = vector.load %arg4[%231, %c0_62] : memref<8x128xf32, #tpu.memory_space<vmem>>, vector<1x128xf32>
    %cst_63 = arith.constant 0.000000e+00 : f32
    %233 = vector.broadcast %cst_63 : f32 to vector<1x128xf32>
    %234 = arith.cmpf ogt, %232, %233 : vector<1x128xf32>
    %235 = arith.index_cast %c6_i32 : i32 to index
    %c0_64 = arith.constant 0 : index
    %236 = vector.load %arg3[%235, %c0_64] : memref<8x128xf32, #tpu.memory_space<vmem>>, vector<1x128xf32>
    %237 = vector.broadcast %cst_10 : f32 to vector<1x128xf32>
    %238 = arith.select %234, %236, %237 : vector<1x128xi1>, vector<1x128xf32>
    %239 = vector.broadcast %238 : vector<1x128xf32> to vector<8x128xf32>
    %240 = arith.cmpf ogt, %239, %7 : vector<8x128xf32>
    %241 = vector.broadcast %238 : vector<1x128xf32> to vector<8x128xf32>
    %242 = arith.cmpf oeq, %241, %7 : vector<8x128xf32>
    %243 = vector.broadcast %c6_i32 : i32 to vector<8x128xi32>
    %244 = arith.cmpi slt, %243, %8 : vector<8x128xi32>
    %245 = arith.andi %242, %244 : vector<8x128xi1>
    %246 = arith.ori %240, %245 : vector<8x128xi1>
    %cst_65 = arith.constant 1.000000e+00 : f32
    %cst_66 = arith.constant 0.000000e+00 : f32
    %247 = vector.broadcast %cst_65 : f32 to vector<8x128xf32>
    %248 = vector.broadcast %cst_66 : f32 to vector<8x128xf32>
    %249 = arith.select %246, %247, %248 : vector<8x128xi1>, vector<8x128xf32>
    %250 = arith.addf %214, %249 : vector<8x128xf32>
    %251 = vector.broadcast %228 : vector<1x128xf32> to vector<8x128xf32>
    %252 = arith.subf %251, %0 : vector<8x128xf32>
    %253 = vector.broadcast %cst_11 : f32 to vector<8x128xf32>
    %254 = arith.mulf %252, %253 : vector<8x128xf32>
    %255 = arith.negf %254 : vector<8x128xf32>
    %256 = math.exp %255 : vector<8x128xf32>
    %cst_67 = arith.constant 1.000000e+00 : f32
    %257 = vector.broadcast %cst_67 : f32 to vector<8x128xf32>
    %258 = arith.addf %257, %256 : vector<8x128xf32>
    %259 = arith.divf %257, %258 : vector<8x128xf32>
    %260 = vector.broadcast %230 : vector<1x128xf32> to vector<8x128xf32>
    %261 = arith.mulf %259, %260 : vector<8x128xf32>
    %262 = arith.addf %226, %261 : vector<8x128xf32>
    %c7_i32 = arith.constant 7 : i32
    %263 = arith.index_cast %c7_i32 : i32 to index
    %c0_68 = arith.constant 0 : index
    %264 = vector.load %arg1[%263, %c0_68] : memref<8x128xf32, #tpu.memory_space<vmem>>, vector<1x128xf32>
    %265 = arith.index_cast %c7_i32 : i32 to index
    %c0_69 = arith.constant 0 : index
    %266 = vector.load %arg2[%265, %c0_69] : memref<8x128xf32, #tpu.memory_space<vmem>>, vector<1x128xf32>
    %267 = arith.index_cast %c7_i32 : i32 to index
    %c0_70 = arith.constant 0 : index
    %268 = vector.load %arg4[%267, %c0_70] : memref<8x128xf32, #tpu.memory_space<vmem>>, vector<1x128xf32>
    %cst_71 = arith.constant 0.000000e+00 : f32
    %269 = vector.broadcast %cst_71 : f32 to vector<1x128xf32>
    %270 = arith.cmpf ogt, %268, %269 : vector<1x128xf32>
    %271 = arith.index_cast %c7_i32 : i32 to index
    %c0_72 = arith.constant 0 : index
    %272 = vector.load %arg3[%271, %c0_72] : memref<8x128xf32, #tpu.memory_space<vmem>>, vector<1x128xf32>
    %273 = vector.broadcast %cst_10 : f32 to vector<1x128xf32>
    %274 = arith.select %270, %272, %273 : vector<1x128xi1>, vector<1x128xf32>
    %275 = vector.broadcast %274 : vector<1x128xf32> to vector<8x128xf32>
    %276 = arith.cmpf ogt, %275, %7 : vector<8x128xf32>
    %277 = vector.broadcast %274 : vector<1x128xf32> to vector<8x128xf32>
    %278 = arith.cmpf oeq, %277, %7 : vector<8x128xf32>
    %279 = vector.broadcast %c7_i32 : i32 to vector<8x128xi32>
    %280 = arith.cmpi slt, %279, %8 : vector<8x128xi32>
    %281 = arith.andi %278, %280 : vector<8x128xi1>
    %282 = arith.ori %276, %281 : vector<8x128xi1>
    %cst_73 = arith.constant 1.000000e+00 : f32
    %cst_74 = arith.constant 0.000000e+00 : f32
    %283 = vector.broadcast %cst_73 : f32 to vector<8x128xf32>
    %284 = vector.broadcast %cst_74 : f32 to vector<8x128xf32>
    %285 = arith.select %282, %283, %284 : vector<8x128xi1>, vector<8x128xf32>
    %286 = arith.addf %250, %285 : vector<8x128xf32>
    %287 = vector.broadcast %264 : vector<1x128xf32> to vector<8x128xf32>
    %288 = arith.subf %287, %0 : vector<8x128xf32>
    %289 = vector.broadcast %cst_11 : f32 to vector<8x128xf32>
    %290 = arith.mulf %288, %289 : vector<8x128xf32>
    %291 = arith.negf %290 : vector<8x128xf32>
    %292 = math.exp %291 : vector<8x128xf32>
    %cst_75 = arith.constant 1.000000e+00 : f32
    %293 = vector.broadcast %cst_75 : f32 to vector<8x128xf32>
    %294 = arith.addf %293, %292 : vector<8x128xf32>
    %295 = arith.divf %293, %294 : vector<8x128xf32>
    %296 = vector.broadcast %266 : vector<1x128xf32> to vector<8x128xf32>
    %297 = arith.mulf %295, %296 : vector<8x128xf32>
    %298 = arith.addf %262, %297 : vector<8x128xf32>
    %c8_i32 = arith.constant 8 : i32
    %cst_76 = arith.constant 1.000000e+00 : f32
    %299 = vector.broadcast %cst_76 : f32 to vector<8x128xf32>
    %300 = arith.addf %299, %286 : vector<8x128xf32>
    %301 = arith.mulf %300, %3 : vector<8x128xf32>
    %302 = arith.mulf %1, %298 : vector<8x128xf32>
    %cst_77 = arith.constant 5.000000e-01 : f32
    %303 = vector.broadcast %cst_77 : f32 to vector<8x128xf32>
    %304 = arith.addf %303, %302 : vector<8x128xf32>
    %305 = arith.mulf %304, %1 : vector<8x128xf32>
    %306 = arith.subf %301, %305 : vector<8x128xf32>
    %307 = arith.mulf %306, %306 : vector<8x128xf32>
    %cst_78 = arith.constant dense<0.000000e+00> : vector<128xf32>
    %308 = vector.multi_reduction <add>, %307, %cst_78 [0] : vector<8x128xf32> to vector<128xf32>
    %309 = vector.shape_cast %308 : vector<128xf32> to vector<1x128xf32>
    %cst_79 = arith.constant dense<0.000000e+00> : vector<128xf32>
    %310 = vector.multi_reduction <add>, %1, %cst_79 [0] : vector<8x128xf32> to vector<128xf32>
    %311 = vector.shape_cast %310 : vector<128xf32> to vector<1x128xf32>
    %312 = arith.mulf %311, %311 : vector<1x128xf32>
    %cst_80 = arith.constant 1.000000e+00 : f32
    %313 = vector.broadcast %cst_80 : f32 to vector<1x128xf32>
    %314 = arith.subf %312, %313 : vector<1x128xf32>
    %315 = arith.mulf %311, %314 : vector<1x128xf32>
    %316 = tpu.reciprocal %315 {approx = true} : vector<1x128xf32> -> vector<1x128xf32>
    %317 = arith.mulf %315, %316 : vector<1x128xf32>
    %cst_81 = arith.constant 2.000000e+00 : f32
    %318 = vector.broadcast %cst_81 : f32 to vector<1x128xf32>
    %319 = arith.subf %318, %317 : vector<1x128xf32>
    %320 = arith.mulf %316, %319 : vector<1x128xf32>
    %cst_82 = arith.constant 6.000000e+00 : f32
    %321 = vector.broadcast %cst_82 : f32 to vector<1x128xf32>
    %322 = arith.mulf %321, %309 : vector<1x128xf32>
    %323 = arith.mulf %322, %320 : vector<1x128xf32>
    %cst_83 = arith.constant 1.000000e+00 : f32
    %324 = vector.broadcast %cst_83 : f32 to vector<1x128xf32>
    %325 = arith.subf %324, %323 : vector<1x128xf32>
    %c0_84 = arith.constant 0 : index
    %c0_85 = arith.constant 0 : index
    %326 = vector.load %arg5[%c0_84, %c0_85] : memref<1x128xf32, #tpu.memory_space<vmem>>, vector<1x128xf32>
    tpu.vector_store %arg5[%c0_84, %c0_85], %325 {strides = array<i32>} : memref<1x128xf32, #tpu.memory_space<vmem>>, vector<1x128xf32>,
    return
  }
  func.func @transform_0(%arg0: i32) -> (i32, i32) {
    %c0_i32 = arith.constant 0 : i32
    %c0_i32_0 = arith.constant 0 : i32
    return %c0_i32, %arg0 : i32, i32
  }
  func.func @transform_1(%arg0: i32) -> (i32, i32) {
    %c0_i32 = arith.constant 0 : i32
    %c0_i32_0 = arith.constant 0 : i32
    return %c0_i32, %arg0 : i32, i32
  }
  func.func @transform_2(%arg0: i32) -> (i32, i32) {
    %c0_i32 = arith.constant 0 : i32
    %c0_i32_0 = arith.constant 0 : i32
    return %c0_i32, %arg0 : i32, i32
  }
  func.func @transform_3(%arg0: i32) -> (i32, i32) {
    %c0_i32 = arith.constant 0 : i32
    %c0_i32_0 = arith.constant 0 : i32
    return %c0_i32, %arg0 : i32, i32
  }
  func.func @transform_4(%arg0: i32) -> (i32, i32) {
    %c0_i32 = arith.constant 0 : i32
    %c0_i32_0 = arith.constant 0 : i32
    return %c0_i32, %arg0 : i32, i32
  }
}

</mosaic_0001>

<bundles_post_ra>
// kernel: tpu_custom_call.1
= control target key start
LH: loop header
LB: loop body
LE: loop exit
PB: predicated region body
PF: predicated region fallthrough
CT: control target
= control target key end

     0   :  { %9 = vsyncpa [#allocation3], 0  ;;  %s772_s0 = inlined_call_operand.hbm [shape: f32[8,128], index: 0, kind: input, shape index: {}]   ;;  %s773_s1 = inlined_call_operand.hbm [shape: f32[8,128], index: 1, kind: input, shape index: {}]   ;;  %s774_s2 = inlined_call_operand.hbm [shape: f32[8,128], index: 2, kind: input, shape index: {}]   ;;  %s775_s3 = inlined_call_operand.vmem [shape: f32[8,128], index: 3, kind: input, shape index: {}]   ;;  %s776_s4 = inlined_call_operand.hbm [shape: f32[1,128], index: 4, kind: output, shape index: {}]  }
   0x1   :  { %10 = vsyncpa [#allocation6], 0 }
   0x2   :  { %11 = vsyncpa [#allocation4], 0  ;;  %s537_s15 = smov [#allocation5]   ;;  %s538_s17 = smov [#allocation2]  }
   0x3   :  { %s28_s16 = sshll.u32 %s537_s15, 4  ;;  %s18_s18 = sshll.u32 %s538_s17, 4  ;;  %s29_s16 = int_to_ptr.vmem [resolvable:$true] %s28_s16  ;;  %s19_s18 = int_to_ptr.vmem [resolvable:$true] %s18_s18 }
   0x4   :  { %s443_s21 = scalar_lea.hbm %s773_s1, 128 }
   0x5   :  { %p444_p0 = scmp.ne.s32.totalorder %s773_s1, %s443_s21  ;;  %p447_p1 = scmp.lt.u32.totalorder %s443_s21, %s773_s1 }
   0x7   :  { %p449_p2 = pnand %p447_p1, %p444_p0 }
   0x9   :  { %452 = shalt.err (!%p449_p2)
}
   0xa   :  { %s453_s26 = scalar_lea.vmem %s29_s16, 128  ;;  %p458_p4 = scmp.lt.s32.totalorder %s29_s16, %s29_s16 }
   0xb   :  { %p454_p3 = scmp.ne.s32.totalorder %s29_s16, %s453_s26  ;;  %p459_p5 = scmp.lt.s32.totalorder %s453_s26, %s453_s26 }
   0xd   :  { %p460_p6 = por %p459_p5, %p458_p4 }
   0xf   :  { %p461_p7 = pnand %p460_p6, %p454_p3 }
  0x11   :  { %464 = shalt.err (!%p461_p7)
}
  0x12   :  { %31 = dma.hbm_to_vmem [thread:$0]  %s773_s1, 128, %s29_s16, [#allocation6]  }
  0x13   :  { %s465_s5 = scalar_lea.hbm %s772_s0, 128 }
  0x14   :  { %p466_p8 = scmp.ne.s32.totalorder %s772_s0, %s465_s5  ;;  %p469_p9 = scmp.lt.u32.totalorder %s465_s5, %s772_s0 }
  0x16   :  { %p471_p10 = pnand %p469_p9, %p466_p8 }
  0x18   :  { %474 = shalt.err (!%p471_p10)
}
  0x19   :  { %s475_s10 = scalar_lea.vmem %s19_s18, 128  ;;  %p480_p12 = scmp.lt.s32.totalorder %s19_s18, %s19_s18 }
  0x1a   :  { %p476_p11 = scmp.ne.s32.totalorder %s19_s18, %s475_s10  ;;  %p481_p13 = scmp.lt.s32.totalorder %s475_s10, %s475_s10 }
  0x1c   :  { %p482_p0 = por %p481_p13, %p480_p12 }
  0x1e   :  { %p483_p1 = pnand %p482_p0, %p476_p11 }
  0x20   :  { %486 = shalt.err (!%p483_p1)
}
  0x21   :  { %21 = dma.hbm_to_vmem [thread:$0]  %s772_s0, 128, %s19_s18, [#allocation3]  }
  0x22   :  { %s539_s12 = smov [#allocation7]   ;;  %s487_s16 = scalar_lea.hbm %s774_s2, 128 }
  0x23   :  { %s38_s13 = sshll.u32 %s539_s12, 4  ;;  %p488_p2 = scmp.ne.s32.totalorder %s774_s2, %s487_s16  ;;  %s39_s13 = int_to_ptr.vmem [resolvable:$true] %s38_s13 }
  0x24   :  { %p491_p3 = scmp.lt.u32.totalorder %s487_s16, %s774_s2 }
  0x26   :  { %p493_p4 = pnand %p491_p3, %p488_p2 }
  0x28   :  { %496 = shalt.err (!%p493_p4)
}
  0x29   :  { %s497_s22 = scalar_lea.vmem %s39_s13, 128  ;;  %p502_p6 = scmp.lt.s32.totalorder %s39_s13, %s39_s13 }
  0x2a   :  { %p498_p5 = scmp.ne.s32.totalorder %s39_s13, %s497_s22  ;;  %p503_p7 = scmp.lt.s32.totalorder %s497_s22, %s497_s22 }
  0x2c   :  { %p504_p8 = por %p503_p7, %p502_p6 }
  0x2e   :  { %p505_p9 = pnand %p504_p8, %p498_p5 }
  0x30   :  { %508 = shalt.err (!%p505_p9)
}
  0x31   :  { %41 = dma.hbm_to_vmem [thread:$0]  %s774_s2, 128, %s39_s13, [#allocation6]  }
  0x32   :  { %531 = dma.done.wait [#allocation3], 128  }
  0x33   :  { %532 = vsyncadd [#allocation3], 4294967168 }
  0x34   :  { %533 = dma.done.wait [#allocation6], 256  }
  0x35   :  { %534 = vsyncadd [#allocation6], 4294967040  ;;  %v59_v0 = vlaneseq  ;;  %v605_v2 = vld [vmem:[#allocation2] sm:$0xff]  ;;  %v65_v6 = vld [vmem:[#allocation7] sm:$0x1] }
  0x36   :  { %v379_v3 = vld [vmem:[#allocation2] ss:$0 sm:$0xff]  ;;  %v382_v9 = vld [vmem:[#allocation2 + $0x1] ss:$0 sm:$0xff]  ;;  %v99_v14 = vld [vmem:[#allocation7 + $0x1] sm:$0x1] }
  0x37   :  { %v603_v1 = vshrl.u32 %v59_v0, 7  ;;  %v610_v4 = vld [vmem:[%s775_s3] sm:$0xff]  ;;  %v82_v7 = vsub.f32 %v379_v3, %v605_v2  ;;  %v116_v13 = vsub.f32 %v382_v9, %v605_v2  ;;  %v55_v16 = vld [vmem:[#allocation7] sm:$0xff]  ;;  %v645_v36 = vld [vmem:[#allocation5] sm:$0xff]  ;;  %v540_v3 = vmov 0.0  }
  0x38   :  { %v63_v5 = vld [vmem:[%s775_s3] sm:$0x1]  ;;  %v97_v12 = vld [vmem:[%s775_s3 + $0x1] sm:$0x1]  ;;  %vm57_vm1 = vcmp.gt.f32.partialorder %v610_v4, 0.0  ;;  %v346_v48 = vrot.slane %v645_v36, 4 }
  0x39   :  { %vm64_vm0 = vcmp.gt.f32.partialorder %v63_v5, 0.0  ;;  %v617_v8 = vsub.s32 0, %v603_v1  ;;  %v380_v11 = vmul.f32 -1.442695, %v82_v7  ;;  %vm98_vm2 = vcmp.gt.f32.partialorder %v97_v12, 0.0 }
  0x3a   :  { %v66_v10 = vsel %vm64_vm0, %v65_v6, -100000.0  ;;  %v385_v15 = vld [vmem:[#allocation2 + $0x2] ss:$0 sm:$0xff]  ;;  %v100_v17 = vsel %vm98_vm2, %v99_v14, -100000.0  ;;  %v383_v18 = vmul.f32 -1.442695, %v116_v13  ;;  %v347_v62 = vadd.f32 %v346_v48, %v645_v36 }
  0x3b   :  { %409 = vpow2.f32 %v380_v11  ;;  %v150_v19 = vsub.f32 %v385_v15, %v605_v2  ;;  %v70_v20 = vrot.slane %v66_v10, %v617_v8  ;;  %v131_v21 = vld [vmem:[%s775_s3 + $0x2] sm:$0x1]  ;;  %v133_v22 = vld [vmem:[#allocation7 + $0x2] sm:$0x1]  ;;  %v388_v23 = vld [vmem:[#allocation2 + $0x3] ss:$0 sm:$0xff]  ;;  %v104_v27 = vrot.slane %v100_v17, %v617_v8 }
  0x3c   :  { %411 = vpow2.f32 %v383_v18  ;;  %vm132_vm3 = vcmp.gt.f32.partialorder %v131_v21, 0.0  ;;  %v184_v25 = vsub.f32 %v388_v23, %v605_v2  ;;  %v632_v26 = vsel %vm57_vm1, %v55_v16, -100000.0  ;;  %v165_v28 = vld [vmem:[%s775_s3 + $0x3] sm:$0x1]  ;;  %v391_v30 = vld [vmem:[#allocation2 + $0x4] ss:$0 sm:$0xff] }
  0x3d   :  { %v386_v24 = vmul.f32 -1.442695, %v150_v19  ;;  %v134_v29 = vsel %vm132_vm3, %v133_v22, -100000.0  ;;  %vm166_vm4 = vcmp.gt.f32.partialorder %v165_v28, 0.0  ;;  %v167_v31 = vld [vmem:[#allocation7 + $0x3] sm:$0x1]  ;;  %v218_v33 = vsub.f32 %v391_v30, %v605_v2 }
  0x3e   :  { %v389_v32 = vmul.f32 -1.442695, %v184_v25  ;;  %vm72_vm5 = vcmp.eq.f32.partialorder %v70_v20, %v632_v26  ;;  %vm73_vm6 = vcmp.gt.s32.totalorder %v603_v1, 0  ;;  %vm107_vm7 = vcmp.gt.s32.totalorder %v603_v1, 1  ;;  %v199_v34 = vld [vmem:[%s775_s3 + $0x4] sm:$0x1] }
  0x3f   :  { %413 = vpow2.f32 %v386_v24  ;;  %v394_v35 = vld [vmem:[#allocation2 + $0x5] ss:$0 sm:$0xff]  ;;  %vm106_vm8 = vcmp.eq.f32.partialorder %v104_v27, %v632_v26  ;;  %v138_v37 = vrot.slane %v134_v29, %v617_v8  ;;  %v392_v38 = vmul.f32 -1.442695, %v218_v33  ;;  %vm651_vm10 = vmand %vm72_vm5, %vm73_vm6  ;;  %v201_v42 = vld [vmem:[#allocation7 + $0x4] sm:$0x1] }
  0x40   :  { %415 = vpow2.f32 %v389_v32  ;;  %v168_v39 = vsel %vm166_vm4, %v167_v31, -100000.0  ;;  %v252_v40 = vsub.f32 %v394_v35, %v605_v2  ;;  %vm71_vm9 = vcmp.gt.f32.partialorder %v70_v20, %v632_v26  ;;  %v397_v43 = vld [vmem:[#allocation2 + $0x6] ss:$0 sm:$0xff]  ;;  %vm108_vm13 = vmand %vm106_vm8, %vm107_vm7  ;;  %v233_v45 = vld [vmem:[%s775_s3 + $0x5] sm:$0x1] }
  0x41   :  { %vm200_vm11 = vcmp.gt.f32.partialorder %v199_v34, 0.0  ;;  %417 = vpow2.f32 %v392_v38  ;;  %vm105_vm12 = vcmp.gt.f32.partialorder %v104_v27, %v632_v26  ;;  %v286_v47 = vsub.f32 %v397_v43, %v605_v2  ;;  %vm670_vm0 = vmor %vm71_vm9, %vm651_vm10  ;;  %v235_v56 = vld [vmem:[#allocation7 + $0x5] sm:$0x1]  ;;  %v267_v60 = vld [vmem:[%s775_s3 + $0x6] sm:$0x1] }
  0x42   :  { %v395_v46 = vmul.f32 -1.442695, %v252_v40  ;;  %vm140_vm14 = vcmp.eq.f32.partialorder %v138_v37, %v632_v26  ;;  %vm141_vm15 = vcmp.gt.s32.totalorder %v603_v1, 2  ;;  %v172_v50 = vrot.slane %v168_v39, %v617_v8  ;;  %vm677_vm1 = vmor %vm105_vm12, %vm108_vm13  ;;  %v400_v61 = vld [vmem:[#allocation2 + $0x7] ss:$0 sm:$0xff] }
  0x43   :  { %v202_v53 = vsel %vm200_vm11, %v201_v42, -100000.0  ;;  %vm234_vm2 = vcmp.gt.f32.partialorder %v233_v45, 0.0  ;;  %v398_v57 = vmul.f32 -1.442695, %v286_v47  ;;  %vm139_vm3 = vcmp.gt.f32.partialorder %v138_v37, %v632_v26  ;;  %vm684_vm4 = vmand %vm140_vm14, %vm141_vm15  ;;  %v269_v10 = vld [vmem:[#allocation7 + $0x6] sm:$0x1] }
  0x44   :  { %419 = vpow2.f32 %v395_v46  ;;  %vm175_vm5 = vcmp.gt.s32.totalorder %v603_v1, 3  ;;  %vm174_vm6 = vcmp.eq.f32.partialorder %v172_v50, %v632_v26  ;;  %v206_v0 = vrot.slane %v202_v53, %v617_v8  ;;  %vm143_vm7 = vmor %vm139_vm3, %vm684_vm4  ;;  %v381_v20 = vld [vmem:[#allocation5] ss:$0 sm:$0xff]  ;;  %v384_v24 = vld [vmem:[#allocation5 + $0x1] ss:$0 sm:$0xff] }
  0x45   :  { %v410_v44 = vpop.eup %409  ;;  %v76_v5 = vsel %vm670_vm0, 1.0, %v540_v3  ;;  %v110_v6 = vsel %vm677_vm1, 1.0, %v540_v3  ;;  %v236_v7 = vsel %vm234_vm2, %v235_v56, -100000.0  ;;  %vm268_vm8 = vcmp.gt.f32.partialorder %v267_v60, 0.0  ;;  %vm176_vm10 = vmand %vm174_vm6, %vm175_vm5  ;;  %v301_v31 = vld [vmem:[%s775_s3 + $0x7] sm:$0x1] }
  0x46   :  { %v86_v49 = vadd.f32 1.0, %v410_v44  ;;  %v412_v51 = vpop.eup %411  ;;  %v320_v11 = vsub.f32 %v400_v61, %v605_v2  ;;  %vm173_vm9 = vcmp.gt.f32.partialorder %v172_v50, %v632_v26  ;;  %vm209_vm11 = vcmp.gt.s32.totalorder %v603_v1, 4  ;;  %v387_v34 = vld [vmem:[#allocation5 + $0x2] ss:$0 sm:$0xff]  ;;  %v303_v42 = vld [vmem:[#allocation7 + $0x7] sm:$0x1] }
  0x47   :  { %v120_v55 = vadd.f32 1.0, %v412_v51  ;;  %v348_v13 = vrot.slane %v347_v62, 2  ;;  %v111_v15 = vadd.f32 %v110_v6, %v76_v5  ;;  %vm208_vm12 = vcmp.eq.f32.partialorder %v206_v0, %v632_v26  ;;  %vm177_vm13 = vmor %vm173_vm9, %vm176_vm10  ;;  %v390_v45 = vld [vmem:[#allocation5 + $0x3] ss:$0 sm:$0xff]  ;;  %v393_v50 = vld [vmem:[#allocation5 + $0x4] ss:$0 sm:$0xff] }
  0x48   :  { %421 = vrcp.f32 %v86_v49  ;;  %v240_v16 = vrot.slane %v236_v7, %v617_v8  ;;  %v401_v17 = vmul.f32 -1.442695, %v320_v11  ;;  %v144_v18 = vsel %vm143_vm7, 1.0, %v540_v3  ;;  %vm720_vm15 = vmand %vm208_vm12, %vm209_vm11  ;;  %v396_v61 = vld [vmem:[#allocation5 + $0x5] ss:$0 sm:$0xff]  ;;  %s541_s3 = smov [#allocation8]  }
  0x49   :  { %v414_v58 = vpop.eup %413  ;;  %423 = vrcp.f32 %v120_v55  ;;  %v270_v19 = vsel %vm268_vm8, %v269_v10, -100000.0  ;;  %vm207_vm14 = vcmp.gt.f32.partialorder %v206_v0, %v632_v26  ;;  %vm243_vm0 = vcmp.gt.s32.totalorder %v603_v1, 5  ;;  %s369_s13 = sshll.u32 %s541_s3, 4  ;;  %s370_s13 = int_to_ptr.vmem [resolvable:$true] %s369_s13 }
  0x4a   :  { %v154_v63 = vadd.f32 1.0, %v414_v58  ;;  %425 = vpow2.f32 %v398_v57  ;;  %v416_v9 = vpop.eup %415  ;;  %v145_v25 = vadd.f32 %v144_v18, %v111_v15  ;;  %vm242_vm1 = vcmp.eq.f32.partialorder %v240_v16, %v632_v26  ;;  %vm735_vm2 = vmor %vm207_vm14, %vm720_vm15  ;;  %s509_s14 = scalar_lea.vmem %s370_s13, 16  ;;  %s513_s15 = scalar_lea.vmem %s370_s13, 32 }
  0x4b   :  { %v188_v12 = vadd.f32 1.0, %v416_v9  ;;  %v418_v14 = vpop.eup %417  ;;  %v274_v28 = vrot.slane %v270_v19, %v617_v8  ;;  %v178_v30 = vsel %vm177_vm13, 1.0, %v540_v3  ;;  %v349_v32 = vadd.f32 %v348_v13, %v347_v62  ;;  %vm244_vm4 = vmand %vm242_vm1, %vm243_vm0  ;;  %v399_v9 = vld [vmem:[#allocation5 + $0x6] ss:$0 sm:$0xff]  ;;  %p510_p10 = scmp.ne.s32.totalorder %s370_s13, %s509_s14  ;;  %p514_p11 = scmp.lt.s32.totalorder %s370_s13, %s370_s13 }
  0x4c   :  { %427 = vrcp.f32 %v154_v63  ;;  %v222_v2 = vadd.f32 1.0, %v418_v14  ;;  %vm241_vm3 = vcmp.gt.f32.partialorder %v240_v16, %v632_v26  ;;  %vm277_vm5 = vcmp.gt.s32.totalorder %v603_v1, 6  ;;  %v402_v16 = vld [vmem:[#allocation5 + $0x7] ss:$0 sm:$0xff]  ;;  %p515_p12 = scmp.lt.s32.totalorder %s513_s15, %s509_s14 }
  0x4d   :  { %429 = vrcp.f32 %v188_v12  ;;  %v179_v40 = vadd.f32 %v178_v30, %v145_v25  ;;  %vm276_vm6 = vcmp.eq.f32.partialorder %v274_v28, %v632_v26  ;;  %vm302_vm7 = vcmp.gt.f32.partialorder %v301_v31, 0.0  ;;  %vm245_vm8 = vmor %vm241_vm3, %vm244_vm4 }
  0x4e   :  { %431 = vpow2.f32 %v401_v17  ;;  %v420_v21 = vpop.eup %419  ;;  %v212_v46 = vsel %vm735_vm2, 1.0, %v540_v3  ;;  %v350_v47 = vrot.slane %v349_v32, 1  ;;  %vm275_vm9 = vcmp.gt.f32.partialorder %v274_v28, %v632_v26  ;;  %vm278_vm10 = vmand %vm276_vm6, %vm277_vm5  ;;  %p516_p13 = por %p515_p12, %p514_p11 }
  0x4f   :  { %433 = vrcp.f32 %v222_v2  ;;  %v256_v27 = vadd.f32 1.0, %v420_v21  ;;  %v304_v51 = vsel %vm302_vm7, %v303_v42, -100000.0  ;;  %v213_v54 = vadd.f32 %v212_v46, %v179_v40  ;;  %vm279_vm11 = vmor %vm275_vm9, %vm278_vm10 }
  0x50   :  { %v246_v56 = vsel %vm245_vm8, 1.0, %v540_v3  ;;  %v351_v58 = vadd.f32 %v350_v47, %v349_v32  ;;  %v308_v62 = vrot.slane %v304_v51, %v617_v8  ;;  %v280_v6 = vsel %vm279_vm11, 1.0, %v540_v3  ;;  %p517_p0 = pnand %p516_p13, %p510_p10 }
  0x51   :  { %435 = vrcp.f32 %v256_v27  ;;  %v247_v0 = vadd.f32 %v246_v56, %v213_v54 }
  0x52   :  { %v422_v23 = vpop.eup %421  ;;  %v352_v7 = vmul.f32 %v351_v58, %v351_v58  ;;  %vm309_vm12 = vcmp.gt.f32.partialorder %v308_v62, %v632_v26 }
  0x53   :  { %v93_v29 = vmul.f32 %v422_v23, %v381_v20  ;;  %v424_v33 = vpop.eup %423  ;;  %v281_v12 = vadd.f32 %v280_v6, %v247_v0  ;;  %v314_v14 = vsel %vm309_vm12, 1.0, %v540_v3 }
  0x54   :  { %v426_v37 = vpop.eup %425  ;;  %v127_v38 = vmul.f32 %v424_v33, %v384_v24  ;;  %v403_v15 = vadd.f32 -1.0, %v352_v7 }
  0x55   :  { %v290_v41 = vadd.f32 1.0, %v426_v37  ;;  %v315_v17 = vadd.f32 %v314_v14, %v281_v12 }
  0x56   :  { %v428_v39 = vpop.eup %427  ;;  %v128_v43 = vadd.f32 %v127_v38, %v93_v29  ;;  %v354_v2 = vmul.f32 %v403_v15, %v351_v58 }
  0x57   :  { %v161_v44 = vmul.f32 %v428_v39, %v387_v34  ;;  %437 = vrcp.f32 %v290_v41  ;;  %v430_v48 = vpop.eup %429  ;;  %v333_v21 = vadd.f32 1.0, %v315_v17 }
  0x58   :  { %v432_v52 = vpop.eup %431  ;;  %v195_v53 = vmul.f32 %v430_v48, %v390_v45 }
  0x59   :  { %v162_v49 = vadd.f32 %v161_v44, %v128_v43  ;;  %v434_v55 = vpop.eup %433  ;;  %v324_v57 = vadd.f32 1.0, %v432_v52  ;;  %v334_v26 = vmul.f32 %v333_v21, %v610_v4 }
  0x5a   :  { %v229_v60 = vmul.f32 %v434_v55, %v393_v50 }
  0x5b   :  { %v196_v59 = vadd.f32 %v195_v53, %v162_v49  ;;  %439 = vrcp.f32 %v324_v57  ;;  %v436_v1 = vpop.eup %435 }
  0x5c   :  { %v263_v5 = vmul.f32 %v436_v1, %v396_v61  ;;  %441 = vrcp.f32 %v354_v2 }
  0x5d   :  { %v230_v63 = vadd.f32 %v229_v60, %v196_v59 }
  0x5f   :  { %v264_v11 = vadd.f32 %v263_v5, %v230_v63 }
  0x61   :  { %v438_v10 = vpop.eup %437 }
  0x62   :  { %v297_v13 = vmul.f32 %v438_v10, %v399_v9 }
  0x64   :  { %v298_v8 = vadd.f32 %v297_v13, %v264_v11 }
  0x65   :  { %v440_v18 = vpop.eup %439 }
  0x66   :  { %v331_v19 = vmul.f32 %v440_v18, %v402_v16  ;;  %v442_v3 = vpop.eup %441 }
  0x67   :  { %v356_v30 = vmul.f32 %v442_v3, %v354_v2 }
  0x68   :  { %v332_v20 = vadd.f32 %v331_v19, %v298_v8 }
  0x69   :  { %v357_v33 = vsub.f32 2.0, %v356_v30 }
  0x6a   :  { %v335_v22 = vmul.f32 %v332_v20, %v645_v36 }
  0x6b   :  { %v358_v37 = vmul.f32 %v442_v3, %v357_v33 }
  0x6c   :  { %v336_v23 = vadd.f32 0.5, %v335_v22 }
  0x6e   :  { %v337_v24 = vmul.f32 %v336_v23, %v645_v36 }
  0x70   :  { %v338_v25 = vsub.f32 %v334_v26, %v337_v24 }
  0x72   :  { %v339_v27 = vmul.f32 %v338_v25, %v338_v25 }
  0x74   :  { %v340_v28 = vrot.slane %v339_v27, 4 }
  0x76   :  { %v341_v29 = vadd.f32 %v340_v28, %v339_v27 }
  0x78   :  { %v342_v31 = vrot.slane %v341_v29, 2 }
  0x7a   :  { %v343_v32 = vadd.f32 %v342_v31, %v341_v29 }
  0x7c   :  { %v344_v34 = vrot.slane %v343_v32, 1 }
  0x7e   :  { %v345_v35 = vadd.f32 %v344_v34, %v343_v32 }
  0x80   :  { %v359_v38 = vmul.f32 6.0, %v345_v35 }
  0x82   :  { %v360_v39 = vmul.f32 %v359_v38, %v358_v37 }
  0x84   :  { %v361_v4 = vsub.f32 1.0, %v360_v39 }
  0x86   :  { %362 = vst [vmem:[#allocation8] sm:$0x1] %v361_v4 }
  0x87   :  { %520 = shalt.err (!%p517_p0)
}
  0x88   :  { %s521_s19 = scalar_lea.hbm %s776_s4, 16 }
  0x89   :  { %p522_p1 = scmp.ne.s32.totalorder %s776_s4, %s521_s19  ;;  %p525_p2 = scmp.lt.u32.totalorder %s521_s19, %s776_s4 }
  0x8b   :  { %p527_p3 = pnand %p525_p2, %p522_p1 }
  0x8d   :  { %530 = shalt.err (!%p527_p3)
}
  0x8e   :  { %372 = dma.vmem_to_hbm [thread:$0]  %s370_s13, 16, %s776_s4, [#allocation4]  }
  0x8f   :  { %535 = dma.done.wait [#allocation4], 16  }
  0x90   :  { %536 = vsyncadd [#allocation4], 4294967280 }
  0x91   :  { %376 = vsyncpa [#allocation3], 1 }
  0x92   :  { %377 = vsyncpa [#allocation6], 1 }
  0x93   :  { %378 = vsyncpa [#allocation4], 1 }

</bundles_post_ra>
